<compile_context>
chip_gen: v7x
topology: tpu7x:2x2x1
jax: 0.10.0
libtpu: 0.0.40
codegen_flags: <defaults>
</compile_context>

<pallas_src>
import functools

import jax
import jax.numpy as jnp
from jax.experimental import pallas as pl
from jax.experimental.pallas import tpu as pltpu


def _hbm_copy_kernel(x_ref, o_ref, *, chunks, rows_per_chunk):
    """Direct HBM->HBM DMA copy (x_ref / o_ref are raw HBM refs)."""

    def body(sem):
        copies = []
        for i in range(chunks):  # static Python loop, chunks is trace-time
            cp = pltpu.make_async_copy(
                x_ref.at[pl.ds(i * rows_per_chunk, rows_per_chunk)],
                o_ref.at[pl.ds(i * rows_per_chunk, rows_per_chunk)],
                sem.at[i],
            )
            cp.start()
            copies.append(cp)
        for cp in copies:
            cp.wait()

    pl.run_scoped(body, pltpu.SemaphoreType.DMA((chunks,)))


def _alias_kernel(x_ref, o_ref):
    # Output buffer aliases the (donated) input; nothing to move.
    # touch() pins a read+write dependency so the op is not reordered away.
    pltpu.touch(o_ref)


def _pick_chunks(rows, row_bytes):
    """Split big copies into a few DMAs so issue/drain overlaps."""
    min_chunk_bytes = 512 * 1024
    for c in (4, 2):
        if rows % c == 0 and (rows // c) * row_bytes >= min_chunk_bytes:
            return c
    return 1


def half_expend(x, *, donate=False):
    """Pallas equivalent of torch: x.view(x.size(0), x.size(1) * 2, -1)."""
    B, C = int(x.shape[0]), int(x.shape[1])
    total = int(x.size)
    out_channels = 2 * C
    assert total % (B * out_channels) == 0, "view shape must be compatible"
    inner = total // (B * out_channels)
    out_shape = (B, out_channels, inner)
    itemsize = jnp.dtype(x.dtype).itemsize

    rows = B * out_channels
    # Metadata-only for the default row-major layout (same bytes as .view).
    x2d = jnp.reshape(x, (rows, inner))
    out_struct = jax.ShapeDtypeStruct((rows, inner), x.dtype)
    hbm_spec = pl.BlockSpec(memory_space=pl.ANY)

    if donate:
        # Zero-HBM-traffic path: output aliases the input buffer.  Only a
        # true saving if the caller actually donates x (else XLA inserts a
        # defensive copy, which is still correct).
        out2d = pl.pallas_call(
            _alias_kernel,
            out_shape=out_struct,
            in_specs=[hbm_spec],
            out_specs=hbm_spec,
            input_output_aliases={0: 0},
        )(x2d)
    else:
        chunks = _pick_chunks(rows, inner * itemsize)
        kernel = functools.partial(
            _hbm_copy_kernel, chunks=chunks, rows_per_chunk=rows // chunks
        )
        out2d = pl.pallas_call(
            kernel,
            out_shape=out_struct,
            in_specs=[hbm_spec],
            out_specs=hbm_spec,
        )(x2d)

    # Final reshape back to (B, 2C, inner) is metadata-only.
    return jnp.reshape(out2d, out_shape)


if __name__ == "__main__":
    key = jax.random.PRNGKey(0)
    B, C, H, W = 2, 4, 16, 16
    x = jax.random.normal(key, (B, C, H, W), dtype=jnp.float32)

    y = half_expend(x)
    y = jax.block_until_ready(y)

    # Reference: same semantics as torch's x.view(B, 2*C, -1).
    y_ref = jnp.reshape(x, (B, 2 * C, -1))

    assert y.shape == (B, 2 * C, (C * H * W) // (2 * C)), y.shape
    assert y.dtype == x.dtype
    assert jnp.array_equal(y, y_ref)

    print("KERNEL_OK")
</pallas_src>

<mosaic_0001>
module attributes {stable_mosaic.version = 11 : i64} {
  func.func @_hbm_copy_kernel(%arg0: memref<16x128xf32, #tpu.memory_space<any>>, %arg1: memref<16x128xf32, #tpu.memory_space<any>>) attributes {dimension_semantics = [], scalar_prefetch = 0 : i64, scratch_operands = 0 : i64, tpu.core_type = #tpu.core_type<tc>} {
    "tpu.region"() ({
      %0 = tpu.sem_alloc : memref<1x!tpu.dma_semaphore, #tpu.memory_space<semaphore_mem>>
      %c0_i32 = arith.constant 0 : i32
      %c0_i32_0 = arith.constant 0 : i32
      %c0_i32_1 = arith.constant 0 : i32
      %1 = tpu.memref_slice %arg0[%c0_i32_0, %c0_i32_1] : memref<16x128xf32, #tpu.memory_space<any>> -> memref<16x128xf32, #tpu.memory_space<any>>
      %c0_i32_2 = arith.constant 0 : i32
      %c0_i32_3 = arith.constant 0 : i32
      %2 = tpu.memref_slice %arg1[%c0_i32_2, %c0_i32_3] : memref<16x128xf32, #tpu.memory_space<any>> -> memref<16x128xf32, #tpu.memory_space<any>>
      %3 = tpu.memref_slice %0[%c0_i32] : memref<1x!tpu.dma_semaphore, #tpu.memory_space<semaphore_mem>> -> memref<1x!tpu.dma_semaphore, #tpu.memory_space<semaphore_mem>>
      %4 = tpu.memref_squeeze %3 : memref<1x!tpu.dma_semaphore, #tpu.memory_space<semaphore_mem>> -> memref<!tpu.dma_semaphore, #tpu.memory_space<semaphore_mem>>
      tpu.enqueue_dma source(%1 : memref<16x128xf32, #tpu.memory_space<any>>) target(%2 : memref<16x128xf32, #tpu.memory_space<any>>) target_semaphore(%4 : memref<!tpu.dma_semaphore, #tpu.memory_space<semaphore_mem>>)
      %c0_i32_4 = arith.constant 0 : i32
      %c0_i32_5 = arith.constant 0 : i32
      %c0_i32_6 = arith.constant 0 : i32
      %5 = tpu.memref_slice %arg0[%c0_i32_5, %c0_i32_6] : memref<16x128xf32, #tpu.memory_space<any>> -> memref<16x128xf32, #tpu.memory_space<any>>
      %c0_i32_7 = arith.constant 0 : i32
      %c0_i32_8 = arith.constant 0 : i32
      %6 = tpu.memref_slice %arg1[%c0_i32_7, %c0_i32_8] : memref<16x128xf32, #tpu.memory_space<any>> -> memref<16x128xf32, #tpu.memory_space<any>>
      %7 = tpu.memref_slice %0[%c0_i32_4] : memref<1x!tpu.dma_semaphore, #tpu.memory_space<semaphore_mem>> -> memref<1x!tpu.dma_semaphore, #tpu.memory_space<semaphore_mem>>
      %8 = tpu.memref_squeeze %7 : memref<1x!tpu.dma_semaphore, #tpu.memory_space<semaphore_mem>> -> memref<!tpu.dma_semaphore, #tpu.memory_space<semaphore_mem>>
      tpu.wait_dma2 semaphore(%8 : memref<!tpu.dma_semaphore, #tpu.memory_space<semaphore_mem>>) src(%5 : memref<16x128xf32, #tpu.memory_space<any>>) dst(%6 : memref<16x128xf32, #tpu.memory_space<any>>)
      tpu.yield
    }) : () -> ()
    return
  }
}

</mosaic_0001>

<bundles_post_ra>
// kernel: tpu_custom_call.1
= control target key start
LH: loop header
LB: loop body
LE: loop exit
PB: predicated region body
PF: predicated region fallthrough
CT: control target
= control target key end

     0   :  { %s27_s6 = smov [#allocation2]   ;;  %s28_s7 = smov [#allocation3]   ;;  %s46_s0 = inlined_call_operand.hbm [shape: f32[16,128], index: 0, kind: input, shape index: {}]   ;;  %s47_s1 = inlined_call_operand.hbm [shape: f32[16,128], index: 1, kind: output, shape index: {}]  }
   0x1   :  { %s29_s8 = smov 0  }
   0x2   :  { %18 = dma.general %s46_s0, 256, %s47_s1, %s27_s6, %s28_s7, [#allocation4], %s29_s8, 0  }
   0x3   :  { %25 = dma.done.wait [#allocation2], 256 }
   0x4   :  { %26 = vsyncadd [#allocation2], 4294967040 }

</bundles_post_ra>
